<compile_context>
chip_gen: v5e
topology: v5e:2x2
jax: 0.10.0
libtpu: 0.0.40
codegen_flags: <defaults>
</compile_context>

<pallas_src>
import jax
import jax.numpy as jnp
from jax import lax
from jax.experimental import pallas as pl
from jax.experimental.pallas import tpu as pltpu


def mlp_kernel(x_ref, w1_ref, b1_ref, w2_ref, b2_ref, w3_ref, b3_ref, out_ref):
    x = x_ref[...]                                              # (bm, in), batch on sublanes
    # Layer 1: (5, in) contracted with (bm, in) over the feature dim -> (5, bm).
    # The contraction layout folds x's orientation into the MXU feed (no explicit
    # transpose); from here on the batch lives on the lane axis.
    h1 = lax.dot_general(w1_ref[...], x, (((1,), (1,)), ((), ())),
                         preferred_element_type=jnp.float32)
    h1 = jnp.maximum(h1 + b1_ref[...], 0.0)                     # (5, bm), bias (5,1) bcast
    # Layer 2: (10, 5) @ (5, bm) -> (10, bm)
    h2 = jnp.dot(w2_ref[...], h1, preferred_element_type=jnp.float32)
    h2 = jnp.maximum(h2 + b2_ref[...], 0.0)                     # (10, bm)
    # Output layer: (1, 10) @ (10, bm) -> (1, bm), already lane-dense.
    y = jnp.dot(w3_ref[...], h2, preferred_element_type=jnp.float32) + b3_ref[...]
    out_ref[...] = y[None].astype(out_ref.dtype)                # (1, 1, bm) slab


def _ceil_to(n, m):
    return ((n + m - 1) // m) * m


def mlp_forward(x, params, *, block_m=2048):
    """x: [B, in_features] float32.
    params: PyTorch-orientation weights (w: [out, in]) and column biases (b: [out, 1])."""
    B, in_features = x.shape
    w1, b1 = params["w1"], params["b1"]   # [5, in], [5, 1]
    w2, b2 = params["w2"], params["b2"]   # [10, 5], [10, 1]
    w3, b3 = params["w3"], params["b3"]   # [1, 10], [1, 1]

    # Batch tile selection: at most block_m rows per tile, multiple of 8.  If the batch
    # would fit in one tile but is large enough to matter, split it into >= 2 tiles so
    # both v7x TensorCores get work (harmless on v5e/v6e).  No HBM-side padding of x:
    # the ragged tail tile is handled by Pallas's edge-block masking.
    if B > block_m:
        bm = block_m
    else:
        n_tiles = 2 if B >= 256 else 1
        bm = max(8, _ceil_to(-(-B // n_tiles), 8))
    num_blocks = -(-B // bm)  # cdiv

    # Constant block index -> weights/biases stay resident in VMEM across grid steps.
    full = lambda a: pl.BlockSpec(a.shape, lambda i: (0,) * a.ndim)

    out = pl.pallas_call(
        mlp_kernel,
        out_shape=jax.ShapeDtypeStruct((num_blocks, 1, bm), x.dtype),
        grid_spec=pltpu.PrefetchScalarGridSpec(
            num_scalar_prefetch=0,
            grid=(num_blocks,),
            in_specs=[
                pl.BlockSpec((bm, in_features), lambda i: (i, 0)),  # x row tile
                full(w1), full(b1),
                full(w2), full(b2),
                full(w3), full(b3),
            ],
            # Lane-dense output: one (1, bm) row slab per grid step.
            out_specs=pl.BlockSpec((1, 1, bm), lambda i: (i, 0, 0)),
        ),
        compiler_params=pltpu.CompilerParams(
            dimension_semantics=("parallel",),   # independent batch tiles (megacore on v7x)
        ),
    )(x, w1, b1, w2, b2, w3, b3)

    # Layout plumbing only: back to the PyTorch-style (B, 1) column; drop tail rows.
    return out.reshape(num_blocks * bm, 1)[:B]


def init_params(key, in_features):
    """Deterministic init mirroring the PyTorch module's layer shapes.
    Weights kept in PyTorch orientation [out, in]; biases stored as [out, 1] columns."""
    k1, k2, k3, k4, k5, k6 = jax.random.split(key, 6)

    def uniform(k, shape, fan_in):
        bound = 1.0 / jnp.sqrt(fan_in)
        return jax.random.uniform(k, shape, jnp.float32, -bound, bound)

    return {
        "w1": uniform(k1, (5, in_features), in_features),
        "b1": uniform(k2, (5, 1), in_features),
        "w2": uniform(k3, (10, 5), 5),
        "b2": uniform(k4, (10, 1), 5),
        "w3": uniform(k5, (1, 10), 10),
        "b3": uniform(k6, (1, 1), 10),
    }


def mlp_reference(x, params):
    h1 = jnp.maximum(x @ params["w1"].T + params["b1"][:, 0], 0.0)
    h2 = jnp.maximum(h1 @ params["w2"].T + params["b2"][:, 0], 0.0)
    return h2 @ params["w3"].T + params["b3"][:, 0]


if __name__ == "__main__":
    key = jax.random.PRNGKey(0)
    k_x, k_p = jax.random.split(key)

    in_features = 16
    params = init_params(k_p, in_features)

    # Small, module-consistent shapes:
    #   64  -> single full tile
    #   37  -> single ragged tile (edge-block masking, no HBM pad)
    #   300 -> two tiles (megacore path) with a ragged tail tile
    for batch in (64, 37, 300):
        x = jax.random.normal(jax.random.fold_in(k_x, batch),
                              (batch, in_features), jnp.float32)
        out = jax.block_until_ready(mlp_forward(x, params))
        ref = mlp_reference(x, params)
        assert out.shape == (batch, 1), out.shape
        assert jnp.allclose(out, ref, atol=1e-5, rtol=1e-5), f"mismatch at batch={batch}"

    print("KERNEL_OK")
</pallas_src>

<mosaic_0001>
module attributes {stable_mosaic.version = 11 : i64} {
  func.func @mlp_kernel(%arg0: i32, %arg1: memref<64x16xf32, #tpu.memory_space<vmem>>, %arg2: memref<5x16xf32, #tpu.memory_space<vmem>>, %arg3: memref<5x1xf32, #tpu.memory_space<vmem>>, %arg4: memref<10x5xf32, #tpu.memory_space<vmem>>, %arg5: memref<10x1xf32, #tpu.memory_space<vmem>>, %arg6: memref<1x10xf32, #tpu.memory_space<vmem>>, %arg7: memref<1x1xf32, #tpu.memory_space<vmem>>, %arg8: memref<1x1x64xf32, #tpu.memory_space<vmem>>) attributes {dimension_semantics = [#tpu.dimension_semantics<parallel>], iteration_bounds = array<i64: 1>, scalar_prefetch = 0 : i64, scratch_operands = 0 : i64, tpu.core_type = #tpu.core_type<tc>, window_params = [{transform_indices = @transform_0, window_bounds = array<i64: 64, 16>}, {pipeline_mode = #tpu.pipeline_mode<synchronous>, transform_indices = @transform_1, window_bounds = array<i64: 5, 16>}, {pipeline_mode = #tpu.pipeline_mode<synchronous>, transform_indices = @transform_2, window_bounds = array<i64: 5, 1>}, {pipeline_mode = #tpu.pipeline_mode<synchronous>, transform_indices = @transform_3, window_bounds = array<i64: 10, 5>}, {pipeline_mode = #tpu.pipeline_mode<synchronous>, transform_indices = @transform_4, window_bounds = array<i64: 10, 1>}, {pipeline_mode = #tpu.pipeline_mode<synchronous>, transform_indices = @transform_5, window_bounds = array<i64: 1, 10>}, {pipeline_mode = #tpu.pipeline_mode<synchronous>, transform_indices = @transform_6, window_bounds = array<i64: 1, 1>}, {transform_indices = @transform_7, window_bounds = array<i64: 1, 1, 64>}]} {
    %c0 = arith.constant 0 : index
    %c0_0 = arith.constant 0 : index
    %0 = vector.load %arg1[%c0, %c0_0] : memref<64x16xf32, #tpu.memory_space<vmem>>, vector<64x16xf32>
    %c0_1 = arith.constant 0 : index
    %c0_2 = arith.constant 0 : index
    %1 = vector.load %arg2[%c0_1, %c0_2] : memref<5x16xf32, #tpu.memory_space<vmem>>, vector<5x16xf32>
    %cst = arith.constant dense<0.000000e+00> : vector<5x64xf32>
    %2 = tpu.matmul %1, %0, %cst {dimension_numbers = #tpu.dot_dimension_numbers<[1], [1], [0], [0], [0, 0, 1, 0], [], []>} : vector<5x16xf32>, vector<64x16xf32>, vector<5x64xf32> -> vector<5x64xf32>
    %c0_3 = arith.constant 0 : index
    %c0_4 = arith.constant 0 : index
    %3 = vector.load %arg3[%c0_3, %c0_4] : memref<5x1xf32, #tpu.memory_space<vmem>>, vector<5x1xf32>
    %4 = vector.broadcast %3 : vector<5x1xf32> to vector<5x64xf32>
    %5 = arith.addf %2, %4 : vector<5x64xf32>
    %cst_5 = arith.constant 0.000000e+00 : f32
    %6 = vector.broadcast %cst_5 : f32 to vector<5x64xf32>
    %7 = arith.maximumf %5, %6 : vector<5x64xf32>
    %c0_6 = arith.constant 0 : index
    %c0_7 = arith.constant 0 : index
    %8 = vector.load %arg4[%c0_6, %c0_7] : memref<10x5xf32, #tpu.memory_space<vmem>>, vector<10x5xf32>
    %cst_8 = arith.constant dense<0.000000e+00> : vector<10x64xf32>
    %9 = tpu.matmul %8, %7, %cst_8 {dimension_numbers = #tpu.dot_dimension_numbers<[1], [0], [0], [1], [0, 0, 1, 1], [], []>} : vector<10x5xf32>, vector<5x64xf32>, vector<10x64xf32> -> vector<10x64xf32>
    %c0_9 = arith.constant 0 : index
    %c0_10 = arith.constant 0 : index
    %10 = vector.load %arg5[%c0_9, %c0_10] : memref<10x1xf32, #tpu.memory_space<vmem>>, vector<10x1xf32>
    %11 = vector.broadcast %10 : vector<10x1xf32> to vector<10x64xf32>
    %12 = arith.addf %9, %11 : vector<10x64xf32>
    %cst_11 = arith.constant 0.000000e+00 : f32
    %13 = vector.broadcast %cst_11 : f32 to vector<10x64xf32>
    %14 = arith.maximumf %12, %13 : vector<10x64xf32>
    %c0_12 = arith.constant 0 : index
    %c0_13 = arith.constant 0 : index
    %15 = vector.load %arg6[%c0_12, %c0_13] : memref<1x10xf32, #tpu.memory_space<vmem>>, vector<1x10xf32>
    %cst_14 = arith.constant dense<0.000000e+00> : vector<1x64xf32>
    %16 = tpu.matmul %15, %14, %cst_14 {dimension_numbers = #tpu.dot_dimension_numbers<[1], [0], [0], [1], [0, 0, 1, 1], [], []>} : vector<1x10xf32>, vector<10x64xf32>, vector<1x64xf32> -> vector<1x64xf32>
    %c0_15 = arith.constant 0 : index
    %c0_16 = arith.constant 0 : index
    %17 = vector.load %arg7[%c0_15, %c0_16] : memref<1x1xf32, #tpu.memory_space<vmem>>, vector<1x1xf32>
    %18 = vector.broadcast %17 : vector<1x1xf32> to vector<1x64xf32>
    %19 = arith.addf %16, %18 : vector<1x64xf32>
    %20 = vector.shape_cast %19 : vector<1x64xf32> to vector<1x1x64xf32>
    %c0_17 = arith.constant 0 : index
    %c0_18 = arith.constant 0 : index
    %c0_19 = arith.constant 0 : index
    %21 = vector.load %arg8[%c0_17, %c0_18, %c0_19] : memref<1x1x64xf32, #tpu.memory_space<vmem>>, vector<1x1x64xf32>
    tpu.vector_store %arg8[%c0_17, %c0_18, %c0_19], %20 {strides = array<i32>} : memref<1x1x64xf32, #tpu.memory_space<vmem>>, vector<1x1x64xf32>,
    return
  }
  func.func @transform_0(%arg0: i32) -> (i32, i32) {
    %c0_i32 = arith.constant 0 : i32
    %c0_i32_0 = arith.constant 0 : i32
    return %arg0, %c0_i32 : i32, i32
  }
  func.func @transform_1(%arg0: i32) -> (i32, i32) {
    %c0_i32 = arith.constant 0 : i32
    %c0_i32_0 = arith.constant 0 : i32
    %c0_i32_1 = arith.constant 0 : i32
    return %c0_i32, %c0_i32_0 : i32, i32
  }
  func.func @transform_2(%arg0: i32) -> (i32, i32) {
    %c0_i32 = arith.constant 0 : i32
    %c0_i32_0 = arith.constant 0 : i32
    %c0_i32_1 = arith.constant 0 : i32
    return %c0_i32, %c0_i32_0 : i32, i32
  }
  func.func @transform_3(%arg0: i32) -> (i32, i32) {
    %c0_i32 = arith.constant 0 : i32
    %c0_i32_0 = arith.constant 0 : i32
    %c0_i32_1 = arith.constant 0 : i32
    return %c0_i32, %c0_i32_0 : i32, i32
  }
  func.func @transform_4(%arg0: i32) -> (i32, i32) {
    %c0_i32 = arith.constant 0 : i32
    %c0_i32_0 = arith.constant 0 : i32
    %c0_i32_1 = arith.constant 0 : i32
    return %c0_i32, %c0_i32_0 : i32, i32
  }
  func.func @transform_5(%arg0: i32) -> (i32, i32) {
    %c0_i32 = arith.constant 0 : i32
    %c0_i32_0 = arith.constant 0 : i32
    %c0_i32_1 = arith.constant 0 : i32
    return %c0_i32, %c0_i32_0 : i32, i32
  }
  func.func @transform_6(%arg0: i32) -> (i32, i32) {
    %c0_i32 = arith.constant 0 : i32
    %c0_i32_0 = arith.constant 0 : i32
    %c0_i32_1 = arith.constant 0 : i32
    return %c0_i32, %c0_i32_0 : i32, i32
  }
  func.func @transform_7(%arg0: i32) -> (i32, i32, i32) {
    %c0_i32 = arith.constant 0 : i32
    %c0_i32_0 = arith.constant 0 : i32
    %c0_i32_1 = arith.constant 0 : i32
    return %arg0, %c0_i32, %c0_i32_0 : i32, i32, i32
  }
}

</mosaic_0001>

<bundles_post_ra>
// kernel: tpu_custom_call.1
= control target key start
LH: loop header
LB: loop body
LE: loop exit
PB: predicated region body
PF: predicated region fallthrough
CT: control target
= control target key end

     0   :  { %s343_s0 = inlined_call_operand.vmem [shape: f32[64,16], index: 0, kind: input, shape index: {}]   ;;  %s344_s1 = inlined_call_operand.vmem [shape: f32[5,16], index: 1, kind: input, shape index: {}]   ;;  %s345_s2 = inlined_call_operand.vmem [shape: f32[5,1], index: 2, kind: input, shape index: {}]   ;;  %s346_s3 = inlined_call_operand.vmem [shape: f32[10,5], index: 3, kind: input, shape index: {}]   ;;  %s347_s4 = inlined_call_operand.vmem [shape: f32[10,1], index: 4, kind: input, shape index: {}]   ;;  %s348_s5 = inlined_call_operand.vmem [shape: f32[1,10], index: 5, kind: input, shape index: {}]   ;;  %s349_s6 = inlined_call_operand.<no memory space> [shape: f32[1,1], index: 6, kind: input, shape index: {}]   ;;  %s350_s7 = inlined_call_operand.hbm [shape: f32[1,1,64], index: 7, kind: output, shape index: {}]  }
   0x1   :  { %v12_v0 = vstv %s349_s6 }
   0x2   :  { %13 = vst [vmem:[#allocation2] sm:$0x1] %v12_v0 }
   0x3   :  { %v36_v1 = vld [vmem:[%s343_s0 + $0x38] sm:$0xff]  ;;  %vm44_vm0 = vcmask 130048   ;;  %v241_v2 = vmov 0   ;;  %v35_v3 = vld [vmem:[%s343_s0 + $0x30] sm:$0xff]  ;;  %v38_v4 = vld [vmem:[%s345_s2] sm:$0x1f] }
   0x4   :  { %197 = vmatpush.xpose.msk.msra.mxu0 %vm44_vm0, %v36_v1  ;;  %213 = vset.pattern.permute.xlu0 %v241_v2 }
   0x5   :  { %214 = vset.pattern.permute.xlu1 %v241_v2 }
   0x6   :  { %14 = vsyncpa [#allocation4], 0  ;;  %41 = vperm.xlu0 %213, %v38_v4   ;;  %v34_v5 = vld [vmem:[%s343_s0 + $0x28] sm:$0xff]  ;;  %v33_v7 = vld [vmem:[%s343_s0 + $0x20] sm:$0xff]  ;;  %vm114_vm1 = vcmask 1044480   ;;  %vm107_vm2 = vcmask 39936  }
   0x7   :  { %v96_v6 = vld [vmem:[%s347_s4 + $0x8] sm:$0x3]  ;;  %v32_v8 = vld [vmem:[%s343_s0 + $0x18] sm:$0xff]  ;;  %v31_v9 = vld [vmem:[%s343_s0 + $0x10] sm:$0xff]  ;;  %vm155_vm3 = vcmask 1041408   ;;  %vm151_vm4 = vcmask 80896  }
   0x8   :  { %198 = vmatpush.xpose.msk.msra.mxu0 %vm44_vm0, %v35_v3  ;;  %v30_v10 = vld [vmem:[%s343_s0 + $0x8] sm:$0xff]  ;;  %v29_v11 = vld [vmem:[%s343_s0] sm:$0xff]  ;;  %s188_s8 = sshll.u32 %s350_s7, 4  ;;  %vm179_vm5 = vcmask 516096   ;;  %s189_s8 = int_to_ptr.hbm [resolvable:$true] %s188_s8 }
   0x9   :  { %v37_v12 = vld [vmem:[%s344_s1] sm:$0x1f]  ;;  %v94_v20 = vld [vmem:[%s346_s3 + $0x8] sm:$0x3] }
   0xa   :  { %v95_v13 = vld [vmem:[%s347_s4] sm:$0xff] }
   0xb   :  { %99 = vperm.xlu1 %214, %v95_v13   ;;  %v144_v14 = vld [vmem:[#allocation2] sm:$0x1] }
   0xc   :  { %199 = vmatpush.xpose.msk.msra.mxu0 %vm44_vm0, %v34_v5  ;;  %v93_v19 = vld [vmem:[%s346_s3] sm:$0xff]  ;;  %s242_s3 = smov [#allocation3]  }
   0xd   :  { %v143_v29 = vld [vmem:[%s348_s5] sm:$0x1]  ;;  %s186_s28 = sshll.u32 %s242_s3, 4  ;;  %s187_s28 = int_to_ptr.vmem [resolvable:$true] %s186_s28 }
   0xe   :  { %104 = vperm.xlu0 %213, %v96_v6  }
  0x10   :  { %200 = vmatpush.xpose.msk.msra.mxu0 %vm44_vm0, %v33_v7 }
  0x13   :  { %147 = vperm.xlu1 %214, %v144_v14  }
  0x14   :  { %201 = vmatpush.xpose.msk.msra.mxu0 %vm44_vm0, %v32_v8 }
  0x18   :  { %202 = vmatpush.xpose.msk.msra.mxu0 %vm44_vm0, %v31_v9 }
  0x1c   :  { %203 = vmatpush.xpose.msk.msra.mxu0 %vm44_vm0, %v30_v10 }
  0x20   :  { %204 = vmatpush.xpose.msk.msra.mxu0 %vm44_vm0, %v29_v11 }
  0x23   :  { %205 = vmatmul.msk.f32.vlgmr.msra.gmra.mxu0 %vm44_vm0, %v37_v12 }
  0x78   :  { %v42_v15 = vpop.permute.xlu0 %41 }
  0x7d   :  { %v100_v22 = vpop.permute.xlu1 %99 }
  0x80   :  { %v105_v23 = vpop.permute.xlu0 %104 }
  0x85   :  { %v148_v30 = vpop.permute.xlu1 %147 }
  0x86   :  { %v150_v31 = vperm.slane %v148_v30, 0 }
  0xa0   :  { %v89_v16 = vpop.f32.mrf.mxu0 }
  0xa1   :  { %v90_v17 = vadd.f32 %v89_v16, %v42_v15 }
  0xa3   :  { %v92_v18 = vmax.f32 %v90_v17, 0.0 }
  0xa5   :  { %206 = vmatpush.msk.msra.mxu1 %vm114_vm1, %v92_v18 }
  0xa6   :  { %207 = vmatmul.msk.f32.vlgmr.msra.gmra.mxu1 %vm107_vm2, %v93_v19 }
  0xae   :  { %208 = vmatmul.msk.f32.gmra.mxu1 %vm107_vm2, %v94_v20 }
 0x123   :  { %v135_v21 = vpop.f32.mrf.mxu1 }
 0x124   :  { %v136_v25 = vadd.f32 %v135_v21, %v100_v22 }
 0x126   :  { %v141_v28 = vmax.f32 %v136_v25, 0.0 }
 0x12b   :  { %v138_v24 = vpop.f32.mrf.mxu1 }
 0x12c   :  { %v139_v26 = vadd.f32 %v138_v24, %v105_v23 }
 0x12e   :  { %v142_v27 = vmax.f32 %v139_v26, 0.0 }
 0x130   :  { %209 = vmatpush.msk.msra.mxu2 %vm155_vm3, %v142_v27 }
 0x132   :  { %174 = vmatpush.msra.mxu2 %v141_v28 }
 0x133   :  { %210 = vmatmul.msk.f32.vlgmr.msra.gmra.mxu2 %vm151_vm4, %v143_v29 }
 0x1b6   :  { %v176_v32 = vpop.f32.mrf.mxu2 }
 0x1b7   :  { %v177_v33 = vadd.f32 %v176_v32, %v150_v31 }
 0x1b9   :  { %180 = vst.msk [vmem:[#allocation3] sm:$0x1] %vm179_vm5, %v177_v33 }
 0x1ba   :  { %191 = dma.vmem_to_hbm [thread:$0]  %s187_s28, 16, %s189_s8, [#allocation4]  }
 0x1bb   :  { %239 = dma.done.wait [#allocation4], 16  }
 0x1bc   :  { %240 = vsyncadd [#allocation4], 4294967280 }
 0x1bd   :  { %196 = vsyncpa [#allocation4], 1 }

</bundles_post_ra>
